<compile_context>
chip_gen: v7x
topology: tpu7x:2x2x1
jax: 0.10.0
libtpu: 0.0.40
codegen_flags: <defaults>
</compile_context>

<pallas_src>
import math

import jax
import jax.numpy as jnp
from jax.experimental import pallas as pl
from jax.experimental.pallas import tpu as pltpu

STATE_DIM = 3       # pendulum observation dim
ACTION_DIM = 1
H1, H2 = 32, 16

_HALF_LOG_2PI = 0.5 * math.log(2.0 * math.pi)

# Packed parameter slab layout ([72, 32] f32, every section 8-row aligned):
#   rows  0: 8   W1    [STATE_DIM, H1]   (data rows 0:3)
#   rows  8:16   b1    [1, H1]           (row 8)
#   rows 16:48   W2    [H1, H2]          (cols 0:16)
#   rows 48:56   b2    [1, H2]           (row 48, cols 0:16)
#   rows 56:64   WhT   [2, H2]           (row 56 = Wmu^T, row 57 = Wsigma^T)
#   rows 64:72   bh    [1, 2]            (row 64, cols 0:2 = [bmu | bsigma])
_PACK_COLS = H1
_PACK_ROWS = 72
_ROW_W1, _ROW_B1, _ROW_W2, _ROW_B2, _ROW_WHT, _ROW_BH = 0, 8, 16, 48, 56, 64


def actor_kernel(x_ref, eps_ref, p_ref, act_ref, lp_ref, ent_ref):
    x = x_ref[...]        # [Bt, STATE_DIM]
    eps = eps_ref[...]    # [Bt, ACTION_DIM]

    w1 = p_ref[pl.ds(_ROW_W1, STATE_DIM), pl.ds(0, H1)]
    b1 = p_ref[pl.ds(_ROW_B1, 1), pl.ds(0, H1)]
    w2 = p_ref[pl.ds(_ROW_W2, H1), pl.ds(0, H2)]
    b2 = p_ref[pl.ds(_ROW_B2, 1), pl.ds(0, H2)]
    wht = p_ref[pl.ds(_ROW_WHT, 2), pl.ds(0, H2)]            # [2, H2] transposed head
    bh = p_ref[pl.ds(_ROW_BH, 1), pl.ds(0, 2 * ACTION_DIM)]  # [1, 2]

    # hidden layers: relu(x @ W + b)  (two serial MXU dots)
    a1 = jnp.maximum(jnp.dot(x, w1, preferred_element_type=jnp.float32) + b1, 0.0)
    a2 = jnp.maximum(jnp.dot(a1, w2, preferred_element_type=jnp.float32) + b2, 0.0)

    # Tiny fused mu/sigma head on the VPU + XLU instead of a 3rd serial MXU
    # dot: broadcast-mul by the transposed head rows, then 16-lane reduce.
    w_mu = wht[0:1, :]                                        # [1, H2]
    w_sg = wht[1:2, :]                                        # [1, H2]
    mu = jnp.sum(a2 * w_mu, axis=-1, keepdims=True) + bh[:, 0:ACTION_DIM]
    z = jnp.sum(a2 * w_sg, axis=-1, keepdims=True) + bh[:, ACTION_DIM:2 * ACTION_DIM]

    # torch: log_sigma = softplus(z); sigma = exp(log_sigma)
    # stable softplus; sigma via exp(softplus(z)) == 1 + exp(z)
    # (overflows to inf for z >~ 88, same as the reference).
    log_sigma = jnp.maximum(z, 0.0) + jnp.log1p(jnp.exp(-jnp.abs(z)))
    sigma = 1.0 + jnp.exp(z)

    # dist.sample() == mu + sigma * eps, eps ~ N(0, 1)
    act_ref[...] = mu + sigma * eps

    # Normal log_prob at the sampled action with (a - mu) == sigma*eps:
    #   -0.5*eps^2 - log_sigma - 0.5*log(2*pi)   (no divide; ulp-level diff)
    lp_ref[...] = -0.5 * (eps * eps) - log_sigma - _HALF_LOG_2PI

    # Normal entropy: 0.5 + 0.5*log(2*pi) + log(sigma)
    ent_ref[...] = 0.5 + _HALF_LOG_2PI + log_sigma


def pack_actor_params(params):
    """Pack all Linear weights/biases into one [72, 32] f32 slab (done once).

    The mu/sigma head weights are stored TRANSPOSED ([2, H2]) so the kernel
    can compute the head on the VPU with a sublane-broadcast row.
    """
    w1, b1, w2, b2, wmu, bmu, wsg, bsg = params
    wht = jnp.concatenate([wmu.T, wsg.T], axis=0)   # [2, H2]
    bh = jnp.concatenate([bmu, bsg], axis=1)        # [1, 2]

    def blk(a, rows):
        z = jnp.zeros((rows, _PACK_COLS), jnp.float32)
        return z.at[:a.shape[0], :a.shape[1]].set(a.astype(jnp.float32))

    return jnp.concatenate(
        [blk(w1, 8), blk(b1, 8), blk(w2, 32), blk(b2, 8), blk(wht, 8), blk(bh, 8)],
        axis=0)  # [_PACK_ROWS, _PACK_COLS]


def _cost_estimate(batch):
    flops = 2 * batch * (STATE_DIM * H1 + H1 * H2 + H2 * 2 * ACTION_DIM)
    bytes_accessed = 4 * (_PACK_ROWS * _PACK_COLS
                          + batch * (STATE_DIM + 4 * ACTION_DIM))
    return pl.CostEstimate(flops=flops,
                           transcendentals=3 * batch,
                           bytes_accessed=bytes_accessed)


def actor_forward(state, packed_params, eps, *, batch_tile=256):
    """Actor forward pass (sample branch) as a single Pallas kernel.

    Returns (actions, log_prob, entropy), each [B, ACTION_DIM] float32.
    Small B: gridless call, everything resident in VMEM.
    Large B (multiple of `batch_tile`): batch-tiled grid, params slab kept
    resident (constant index_map), batch axis marked "parallel" for v7x.
    """
    B = state.shape[0]
    state = state.astype(jnp.float32)
    eps = eps.astype(jnp.float32)
    out_shape = tuple(jax.ShapeDtypeStruct((B, ACTION_DIM), jnp.float32)
                      for _ in range(3))

    if B > batch_tile and B % batch_tile == 0:
        # TODO(synk): for very large B, switch to a batch-in-lanes (transposed)
        # layout so the [Bt, 1] loads/stores become lane-dense.
        grid_spec = pltpu.PrefetchScalarGridSpec(
            num_scalar_prefetch=0,
            grid=(B // batch_tile,),
            in_specs=[
                pl.BlockSpec((batch_tile, STATE_DIM), lambda i: (i, 0)),
                pl.BlockSpec((batch_tile, ACTION_DIM), lambda i: (i, 0)),
                # constant index_map -> weight slab DMA'd once, stays resident
                pl.BlockSpec((_PACK_ROWS, _PACK_COLS), lambda i: (0, 0)),
            ],
            out_specs=[
                pl.BlockSpec((batch_tile, ACTION_DIM), lambda i: (i, 0))
                for _ in range(3)
            ],
        )
        return pl.pallas_call(
            actor_kernel,
            out_shape=out_shape,
            grid_spec=grid_spec,
            compiler_params=pltpu.CompilerParams(
                dimension_semantics=("parallel",)),
            cost_estimate=_cost_estimate(B),
        )(state, eps, packed_params)

    # Small-batch path: gridless, whole arrays in VMEM, single invocation.
    return pl.pallas_call(
        actor_kernel,
        out_shape=out_shape,
        in_specs=[pl.BlockSpec(memory_space=pltpu.MemorySpace.VMEM)] * 3,
        out_specs=[pl.BlockSpec(memory_space=pltpu.MemorySpace.VMEM)] * 3,
        cost_estimate=_cost_estimate(B),
    )(state, eps, packed_params)


def init_actor_params(key, state_dim=STATE_DIM, action_dim=ACTION_DIM):
    """Deterministic init mimicking torch.nn.Linear defaults
    (uniform(-1/sqrt(fan_in), 1/sqrt(fan_in)) for weight and bias)."""
    def linear(key, fan_in, fan_out):
        kw, kb = jax.random.split(key)
        bound = 1.0 / math.sqrt(fan_in)
        # stored as [in, out] so the kernel can do x @ W
        w = jax.random.uniform(kw, (fan_in, fan_out), jnp.float32, -bound, bound)
        b = jax.random.uniform(kb, (1, fan_out), jnp.float32, -bound, bound)
        return w, b

    k1, k2, k3, k4 = jax.random.split(key, 4)
    w1, b1 = linear(k1, state_dim, H1)
    w2, b2 = linear(k2, H1, H2)
    wmu, bmu = linear(k3, H2, action_dim)
    wsg, bsg = linear(k4, H2, action_dim)
    return (w1, b1, w2, b2, wmu, bmu, wsg, bsg)


def actor_reference(state, params, eps):
    """Pure-JAX reference matching the torch module's sample branch."""
    w1, b1, w2, b2, wmu, bmu, wsg, bsg = params
    hi = jax.lax.Precision.HIGHEST
    a = jnp.maximum(jnp.dot(state, w1, precision=hi) + b1, 0.0)
    a = jnp.maximum(jnp.dot(a, w2, precision=hi) + b2, 0.0)
    mu = jnp.dot(a, wmu, precision=hi) + bmu
    z = jnp.dot(a, wsg, precision=hi) + bsg
    log_sigma = jax.nn.softplus(z)
    sigma = jnp.exp(log_sigma)
    actions = mu + sigma * eps
    entropy = 0.5 + _HALF_LOG_2PI + log_sigma
    log_prob = (-((actions - mu) ** 2) / (2.0 * sigma * sigma)
                - log_sigma - _HALF_LOG_2PI)
    return actions, log_prob, entropy


def _check(actions, log_prob, entropy, state, params, eps):
    ref_a, ref_lp, ref_ent = actor_reference(state, params, eps)
    assert bool(jnp.allclose(actions, ref_a, rtol=1e-3, atol=1e-3))
    assert bool(jnp.allclose(log_prob, ref_lp, rtol=1e-3, atol=1e-3))
    assert bool(jnp.allclose(entropy, ref_ent, rtol=1e-3, atol=1e-3))


if __name__ == "__main__":
    key = jax.random.PRNGKey(0)
    kp, kx, ke, kx2, ke2 = jax.random.split(key, 5)

    params = init_actor_params(kp)
    packed = pack_actor_params(params)            # done once, outside the step

    # ---- small-batch (gridless) path ----
    B = 8
    state = jax.random.normal(kx, (B, STATE_DIM), jnp.float32)
    eps = jax.random.normal(ke, (B, ACTION_DIM), jnp.float32)  # dist.sample() noise

    actions, log_prob, entropy = actor_forward(state, packed, eps)
    jax.block_until_ready((actions, log_prob, entropy))
    assert actions.shape == (B, ACTION_DIM)
    assert log_prob.shape == (B, ACTION_DIM)
    assert entropy.shape == (B, ACTION_DIM)
    _check(actions, log_prob, entropy, state, params, eps)

    # ---- large-batch (gridded, resident slab, parallel batch axis) path ----
    B2 = 512
    state2 = jax.random.normal(kx2, (B2, STATE_DIM), jnp.float32)
    eps2 = jax.random.normal(ke2, (B2, ACTION_DIM), jnp.float32)

    a2, lp2, ent2 = actor_forward(state2, packed, eps2, batch_tile=256)
    jax.block_until_ready((a2, lp2, ent2))
    assert a2.shape == (B2, ACTION_DIM)
    _check(a2, lp2, ent2, state2, params, eps2)

    print("KERNEL_OK")
</pallas_src>

<mosaic_0001>
module attributes {stable_mosaic.version = 11 : i64} {
  func.func @actor_kernel(%arg0: memref<8x3xf32, #tpu.memory_space<vmem>>, %arg1: memref<8x1xf32, #tpu.memory_space<vmem>>, %arg2: memref<72x32xf32, #tpu.memory_space<vmem>>, %arg3: memref<8x1xf32, #tpu.memory_space<vmem>>, %arg4: memref<8x1xf32, #tpu.memory_space<vmem>>, %arg5: memref<8x1xf32, #tpu.memory_space<vmem>>) attributes {dimension_semantics = [], scalar_prefetch = 0 : i64, scratch_operands = 0 : i64, tpu.core_type = #tpu.core_type<tc>} {
    %c0 = arith.constant 0 : index
    %c0_0 = arith.constant 0 : index
    %0 = vector.load %arg0[%c0, %c0_0] : memref<8x3xf32, #tpu.memory_space<vmem>>, vector<8x3xf32>
    %c0_1 = arith.constant 0 : index
    %c0_2 = arith.constant 0 : index
    %1 = vector.load %arg1[%c0_1, %c0_2] : memref<8x1xf32, #tpu.memory_space<vmem>>, vector<8x1xf32>
    %c0_3 = arith.constant 0 : index
    %c0_4 = arith.constant 0 : index
    %2 = vector.load %arg2[%c0_3, %c0_4] : memref<72x32xf32, #tpu.memory_space<vmem>>, vector<3x32xf32>
    %c8 = arith.constant 8 : index
    %c0_5 = arith.constant 0 : index
    %3 = vector.load %arg2[%c8, %c0_5] : memref<72x32xf32, #tpu.memory_space<vmem>>, vector<1x32xf32>
    %c16 = arith.constant 16 : index
    %c0_6 = arith.constant 0 : index
    %4 = vector.load %arg2[%c16, %c0_6] : memref<72x32xf32, #tpu.memory_space<vmem>>, vector<32x16xf32>
    %c48 = arith.constant 48 : index
    %c0_7 = arith.constant 0 : index
    %5 = vector.load %arg2[%c48, %c0_7] : memref<72x32xf32, #tpu.memory_space<vmem>>, vector<1x16xf32>
    %c56 = arith.constant 56 : index
    %c0_8 = arith.constant 0 : index
    %6 = vector.load %arg2[%c56, %c0_8] : memref<72x32xf32, #tpu.memory_space<vmem>>, vector<2x16xf32>
    %c64 = arith.constant 64 : index
    %c0_9 = arith.constant 0 : index
    %7 = vector.load %arg2[%c64, %c0_9] : memref<72x32xf32, #tpu.memory_space<vmem>>, vector<1x2xf32>
    %cst = arith.constant dense<0.000000e+00> : vector<8x32xf32>
    %8 = tpu.matmul %0, %2, %cst {dimension_numbers = #tpu.dot_dimension_numbers<[1], [0], [0], [1], [0, 0, 1, 1], [], []>} : vector<8x3xf32>, vector<3x32xf32>, vector<8x32xf32> -> vector<8x32xf32>
    %9 = vector.broadcast %3 : vector<1x32xf32> to vector<8x32xf32>
    %10 = arith.addf %8, %9 : vector<8x32xf32>
    %cst_10 = arith.constant 0.000000e+00 : f32
    %11 = vector.broadcast %cst_10 : f32 to vector<8x32xf32>
    %12 = arith.maximumf %10, %11 : vector<8x32xf32>
    %cst_11 = arith.constant dense<0.000000e+00> : vector<8x16xf32>
    %13 = tpu.matmul %12, %4, %cst_11 {dimension_numbers = #tpu.dot_dimension_numbers<[1], [0], [0], [1], [0, 0, 1, 1], [], []>} : vector<8x32xf32>, vector<32x16xf32>, vector<8x16xf32> -> vector<8x16xf32>
    %14 = vector.broadcast %5 : vector<1x16xf32> to vector<8x16xf32>
    %15 = arith.addf %13, %14 : vector<8x16xf32>
    %cst_12 = arith.constant 0.000000e+00 : f32
    %16 = vector.broadcast %cst_12 : f32 to vector<8x16xf32>
    %17 = arith.maximumf %15, %16 : vector<8x16xf32>
    %18 = vector.extract_strided_slice %6 {offsets = [0, 0], sizes = [1, 16], strides = [1, 1]} : vector<2x16xf32> to vector<1x16xf32>
    %19 = vector.extract_strided_slice %6 {offsets = [1, 0], sizes = [1, 16], strides = [1, 1]} : vector<2x16xf32> to vector<1x16xf32>
    %20 = vector.broadcast %18 : vector<1x16xf32> to vector<8x16xf32>
    %21 = arith.mulf %17, %20 : vector<8x16xf32>
    %cst_13 = arith.constant dense<0.000000e+00> : vector<8xf32>
    %22 = vector.multi_reduction <add>, %21, %cst_13 [1] : vector<8x16xf32> to vector<8xf32>
    %23 = vector.shape_cast %22 : vector<8xf32> to vector<8x1xf32>
    %24 = vector.extract_strided_slice %7 {offsets = [0, 0], sizes = [1, 1], strides = [1, 1]} : vector<1x2xf32> to vector<1x1xf32>
    %25 = vector.broadcast %24 : vector<1x1xf32> to vector<8x1xf32>
    %26 = arith.addf %23, %25 : vector<8x1xf32>
    %27 = vector.broadcast %19 : vector<1x16xf32> to vector<8x16xf32>
    %28 = arith.mulf %17, %27 : vector<8x16xf32>
    %cst_14 = arith.constant dense<0.000000e+00> : vector<8xf32>
    %29 = vector.multi_reduction <add>, %28, %cst_14 [1] : vector<8x16xf32> to vector<8xf32>
    %30 = vector.shape_cast %29 : vector<8xf32> to vector<8x1xf32>
    %31 = vector.extract_strided_slice %7 {offsets = [0, 1], sizes = [1, 1], strides = [1, 1]} : vector<1x2xf32> to vector<1x1xf32>
    %32 = vector.broadcast %31 : vector<1x1xf32> to vector<8x1xf32>
    %33 = arith.addf %30, %32 : vector<8x1xf32>
    %cst_15 = arith.constant 0.000000e+00 : f32
    %34 = vector.broadcast %cst_15 : f32 to vector<8x1xf32>
    %35 = arith.maximumf %33, %34 : vector<8x1xf32>
    %36 = math.absf %33 : vector<8x1xf32>
    %cst_16 = arith.constant 0.000000e+00 : f32
    %37 = vector.broadcast %cst_16 : f32 to vector<8x1xf32>
    %38 = arith.subf %37, %36 : vector<8x1xf32>
    %39 = math.exp %38 : vector<8x1xf32>
    %40 = math.log1p %39 : vector<8x1xf32>
    %41 = arith.addf %35, %40 : vector<8x1xf32>
    %42 = math.exp %33 : vector<8x1xf32>
    %cst_17 = arith.constant 1.000000e+00 : f32
    %43 = vector.broadcast %cst_17 : f32 to vector<8x1xf32>
    %44 = arith.addf %43, %42 : vector<8x1xf32>
    %45 = arith.mulf %44, %1 : vector<8x1xf32>
    %46 = arith.addf %26, %45 : vector<8x1xf32>
    %c0_18 = arith.constant 0 : index
    %c0_19 = arith.constant 0 : index
    %47 = vector.load %arg3[%c0_18, %c0_19] : memref<8x1xf32, #tpu.memory_space<vmem>>, vector<8x1xf32>
    tpu.vector_store %arg3[%c0_18, %c0_19], %46 {strides = array<i32>} : memref<8x1xf32, #tpu.memory_space<vmem>>, vector<8x1xf32>,
    %48 = arith.mulf %1, %1 : vector<8x1xf32>
    %cst_20 = arith.constant -5.000000e-01 : f32
    %49 = vector.broadcast %cst_20 : f32 to vector<8x1xf32>
    %50 = arith.mulf %49, %48 : vector<8x1xf32>
    %51 = arith.subf %50, %41 : vector<8x1xf32>
    %cst_21 = arith.constant 0.918938517 : f32
    %52 = vector.broadcast %cst_21 : f32 to vector<8x1xf32>
    %53 = arith.subf %51, %52 : vector<8x1xf32>
    %c0_22 = arith.constant 0 : index
    %c0_23 = arith.constant 0 : index
    %54 = vector.load %arg4[%c0_22, %c0_23] : memref<8x1xf32, #tpu.memory_space<vmem>>, vector<8x1xf32>
    tpu.vector_store %arg4[%c0_22, %c0_23], %53 {strides = array<i32>} : memref<8x1xf32, #tpu.memory_space<vmem>>, vector<8x1xf32>,
    %cst_24 = arith.constant 1.41893852 : f32
    %55 = vector.broadcast %cst_24 : f32 to vector<8x1xf32>
    %56 = arith.addf %55, %41 : vector<8x1xf32>
    %c0_25 = arith.constant 0 : index
    %c0_26 = arith.constant 0 : index
    %57 = vector.load %arg5[%c0_25, %c0_26] : memref<8x1xf32, #tpu.memory_space<vmem>>, vector<8x1xf32>
    tpu.vector_store %arg5[%c0_25, %c0_26], %56 {strides = array<i32>} : memref<8x1xf32, #tpu.memory_space<vmem>>, vector<8x1xf32>,
    return
  }
}

</mosaic_0001>

<bundles_post_ra>
// kernel: tpu_custom_call.1
= control target key start
LH: loop header
LB: loop body
LE: loop exit
PB: predicated region body
PF: predicated region fallthrough
CT: control target
= control target key end

     0   :  { %vm36_vm0 = vcmask 1042432   ;;  %vm32_vm1 = vcmask 23552   ;;  %v317_v0 = vmov 0.0   ;;  %vm318_vm2 = vmmov 0   ;;  %s320_s12 = smov 1   ;;  %s394_s2 = inlined_call_operand.vmem [shape: f32[72,32], index: 2, kind: input, shape index: {}]   ;;  %s395_s0 = inlined_call_operand.vmem [shape: f32[8,3], index: 0, kind: input, shape index: {}]   ;;  %s396_s1 = inlined_call_operand.vmem [shape: f32[8,1], index: 1, kind: input, shape index: {}]   ;;  %s397_s3 = inlined_call_operand.vmem [shape: f32[8,1], index: 3, kind: output, shape index: {0}]   ;;  %s398_s4 = inlined_call_operand.vmem [shape: f32[8,1], index: 4, kind: output, shape index: {1}]   ;;  %s399_s5 = inlined_call_operand.vmem [shape: f32[8,1], index: 5, kind: output, shape index: {2}]  }
   0x1   :  { %284 = vmatprep.subr.mxu0 %v317_v0  ;;  %v19_v1 = vld [vmem:[%s394_s2] sm:$0x7]  ;;  %286 = vmatprep.mubr.msk.f32.mxu0 %vm318_vm2, %v317_v0  ;;  %v21_v3 = vld [vmem:[%s394_s2 + $0x10] sm:$0xff]  ;;  %v319_v4 = vmov 0.0|0.0   ;;  %v22_v5 = vld [vmem:[%s394_s2 + $0x18] sm:$0xff]  ;;  %vm115_vm3 = vcmask 261120   ;;  %v190_v15 = vlaneseq }
   0x2   :  { %v17_v2 = vld [vmem:[%s395_s0] sm:$0xff]  ;;  %285 = vmatpush3.msk.msra.mxu0 %vm36_vm0, %v19_v1  ;;  %300 = vmatprep.subr.bf16.mxu1 %v319_v4  ;;  %v301_v6 = vpack.c.bf16 %v22_v5, %v21_v3  ;;  %v24_v8 = vld [vmem:[%s394_s2 + $0x28] sm:$0xff]  ;;  %v273_v19 = vld [vmem:[%s394_s2 + $0x30] ss:$0 sm:$0xff]  ;;  %vm195_vm4 = vcmask 130048   ;;  %vm241_vm6 = vcmask 7168  }
   0x3   :  { %287 = vmatmul.mubr.msk.f32.vlgmr.msra.gmra.mrb[0].mxu0 %vm32_vm1, %v17_v2  ;;  %297 = vmatprep.mubr.msk.f32.mxu1 %vm318_vm2, %v317_v0  ;;  %v23_v7 = vld [vmem:[%s394_s2 + $0x20] sm:$0xff]  ;;  %v270_v10 = vld [vmem:[%s394_s2 + $0x8] ss:$0 sm:$0xff]  ;;  %v191_v16 = vshrl.u32 %v190_v15, 7  ;;  %v26_v20 = vld [vmem:[%s394_s2 + $0x38] sm:$0x3] }
   0x4   :  { %302 = vmatpush3.bf16.msra.mxu1 %v301_v6  ;;  %v304_v9 = vpack.c.bf16 %v24_v8, %v23_v7  ;;  %v18_v31 = vld [vmem:[%s396_s1] sm:$0xff]  ;;  %s321_s1 = smov 127  }
   0x5   :  { %303 = vmatprep.subr.bf16.mxu1 %v319_v4  ;;  %v206_v17 = vsub.s32 1, %v191_v16  ;;  %v192_v18 = vsub.s32 0, %v191_v16  ;;  %v275_v32 = vld [vmem:[%s394_s2 + $0x40] ss:$0 sm:$0xff]  ;;  %v243_v59 = vmul.f32 %v18_v31, %v18_v31 }
   0x7   :  { %v207_v24 = vrot.slane %v26_v20, %v206_v17  ;;  %v193_v25 = vrot.slane %v26_v20, %v192_v18  ;;  %v244_v60 = vmul.f32 -0.5, %v243_v59 }
   0x8   :  { %305 = vmatpush3.bf16.msra.mxu1 %v304_v9 }
  0xd6   :  { %v106_v11 = vpop.f32.mrb[0].mxu0 }
  0xd7   :  { %v107_v12 = vadd.f32 %v270_v10, %v106_v11  ;;  %v288_v13 = vpop.f32.mrb[1].mxu0 }
  0xd9   :  { %v110_v14 = vmax.f32 %v107_v12, 0.0 }
  0xdb   :  { %298 = vmatmul.mubr.msk.f32.vlgmr.msra.gmra.mrb[0].mxu1 %vm115_vm3, %v110_v14 }
 0x1ae   :  { %v185_v21 = vpop.f32.mrb[0].mxu1 }
 0x1af   :  { %v186_v22 = vadd.f32 %v273_v19, %v185_v21  ;;  %v299_v23 = vpop.f32.mrb[1].mxu1 }
 0x1b1   :  { %v189_v26 = vmax.f32 %v186_v22, 0.0 }
 0x1b3   :  { %v208_v27 = vmul.f32 %v207_v24, %v189_v26  ;;  %v194_v28 = vmul.f32 %v193_v25, %v189_v26 }
 0x1b5   :  { %v209_v29 = vsel %vm195_vm4, %v208_v27, 0.0  ;;  %v196_v30 = vsel %vm195_vm4, %v194_v28, 0.0 }
 0x1b6   :  { %210 = vadd.xlane.f32.xlu0 %v209_v29  ;;  %197 = vadd.xlane.f32.xlu1 %v196_v30 }
 0x1cc   :  { %232 = vrot.lane.b32.xlu0 %v18_v31, %s320_s12 }
 0x243   :  { %v211_v33 = vpop.xlane.xlu0 %210  ;;  %v198_v55 = vpop.xlane.xlu1 %197 }
 0x244   :  { %v212_v34 = vadd.f32 %v275_v32, %v211_v33  ;;  %v203_v56 = vadd.f32 %v275_v32, %v198_v55 }
 0x246   :  { %v214_v35 = vand.u32 2147483647, %v212_v34  ;;  %v228_v36 = vmul.f32 1.442695, %v212_v34  ;;  %v213_v51 = vmax.f32 %v212_v34, 0.0 }
 0x247   :  { %v233_v40 = vpop.permute.xlu0 %232 }
 0x248   :  { %v215_v37 = vsub.f32 0.0, %v214_v35  ;;  %311 = vpow2.f32 %v228_v36 }
 0x24a   :  { %v216_v38 = vmul.f32 1.442695, %v215_v37 }
 0x24c   :  { %313 = vpow2.f32 %v216_v38 }
 0x252   :  { %v312_v39 = vpop.eup %311 }
 0x253   :  { %v230_v41 = vadd.f32 1.0, %v312_v39 }
 0x255   :  { %v235_v42 = vmul.f32 %v233_v40, %v230_v41 }
 0x256   :  { %v314_v43 = vpop.eup %313 }
 0x257   :  { %237 = vrot.lane.b32.xlu1 %v235_v42, %s321_s1  ;;  %v218_v44 = vadd.f32 1.0, %v314_v43  ;;  %v221_v45 = vmul.f32 -0.5, %v314_v43  ;;  %v224_v47 = vand.u32 2147483647, %v314_v43 }
 0x259   :  { %315 = vlog2.f32 %v218_v44  ;;  %v222_v46 = vadd.f32 1.0, %v221_v45  ;;  %vm225_vm5 = vcmp.lt.f32.partialorder %v224_v47, 0.0004427343 }
 0x25b   :  { %v223_v50 = vmul.f32 %v314_v43, %v222_v46 }
 0x263   :  { %v316_v48 = vpop.eup %315 }
 0x264   :  { %v220_v49 = vmul.f32 0.6931472, %v316_v48 }
 0x266   :  { %v226_v52 = vsel %vm225_vm5, %v223_v50, %v220_v49 }
 0x267   :  { %v227_v53 = vadd.f32 %v226_v52, %v213_v51 }
 0x269   :  { %246 = vrot.lane.b32.xlu1 %v227_v53, %s321_s1  ;;  %v252_v54 = vadd.f32 1.4189385, %v227_v53 }
 0x26d   :  { %254 = vrot.lane.b32.xlu1 %v252_v54, %s321_s1 }
 0x2c9   :  { %v238_v57 = vpop.permute.xlu1 %237 }
 0x2ca   :  { %v240_v58 = vadd.f32 %v238_v57, %v203_v56 }
 0x2cc   :  { %242 = vst.msk [vmem:[%s397_s3] sm:$0xff] %vm241_vm6, %v240_v58 }
 0x2db   :  { %v247_v61 = vpop.permute.xlu1 %246 }
 0x2dc   :  { %v249_v62 = vsub.f32 %v244_v60, %v247_v61 }
 0x2de   :  { %v276_v63 = vadd.f32 -0.9189385, %v249_v62 }
 0x2df   :  { %v255_v0 = vpop.permute.xlu1 %254 }
 0x2e0   :  { %251 = vst.msk [vmem:[%s398_s4] sm:$0xff] %vm241_vm6, %v276_v63  ;;  %257 = vst.msk [vmem:[%s399_s5] sm:$0xff] %vm241_vm6, %v255_v0 }

</bundles_post_ra>
